<compile_context>
chip_gen: v7x
topology: tpu7x:2x2x1
jax: 0.10.0
libtpu: 0.0.40
codegen_flags: <defaults>
</compile_context>

<pallas_src>
import functools

import jax
import jax.numpy as jnp
from jax.experimental import pallas as pl
from jax.experimental.pallas import tpu as pltpu

LANES = 128
SUBLANES = 8
MAX_BLOCK_ROWS = 4096  # 4096 x 128 f32 = 2 MiB per input tile


def _charbonnier_kernel(x_ref, y_ref, o_ref, *, eps, n_valid, block_rows,
                        chunk_blocks):
    p = pl.program_id(0)   # chunk / core axis ("parallel")
    i = pl.program_id(1)   # streaming axis within the chunk ("arbitrary")

    @pl.when(i == 0)
    def _():
        o_ref[...] = jnp.zeros_like(o_ref)

    # Cast after the DMA: HBM traffic stays at the input dtype width.
    xv = x_ref[...].astype(jnp.float32)
    yv = y_ref[...].astype(jnp.float32)
    d = xv - yv
    v = jnp.sqrt(d * d + jnp.float32(eps * eps))

    blk_elems = block_rows * LANES
    # First flat element covered by this logical block.
    # TODO(synk): int32 flat indexing caps inputs at 2^31 elements per tensor.
    start = (p * chunk_blocks + i) * blk_elems

    # Fast path: block entirely inside the valid range -> no masking at all.
    @pl.when(start + blk_elems <= n_valid)
    def _():
        o_ref[0] += v.reshape(-1, SUBLANES, LANES).sum(axis=0)

    # Slow path (boundary / padded / out-of-range blocks only): mask invalid.
    @pl.when(start + blk_elems > n_valid)
    def _():
        row = jax.lax.broadcasted_iota(jnp.int32, v.shape, 0)
        col = jax.lax.broadcasted_iota(jnp.int32, v.shape, 1)
        in_block = row * LANES + col                    # 0 .. blk_elems-1
        mask = in_block < (n_valid - start)             # <= 0 -> all False
        vm = jnp.where(mask, v, 0.0)
        o_ref[0] += vm.reshape(-1, SUBLANES, LANES).sum(axis=0)


def charbonnier_loss(x, y, eps=1e-3):
    """Pallas TPU Charbonnier loss. x, y: same shape (any rank, e.g. NCHW)."""
    assert x.shape == y.shape
    n = int(x.size)

    xf = x.reshape(-1)
    yf = y.reshape(-1)

    # Only pad when the flat size is not lane-aligned (pads < 128 elems).
    pad = (-n) % LANES
    if pad:
        xf = jnp.pad(xf, (0, pad))
        yf = jnp.pad(yf, (0, pad))
    rows = (n + pad) // LANES

    # Block rows: as large as possible (bandwidth) but clamped to the array,
    # always a multiple of 8 (sublane alignment + in-kernel reshape).
    block_rows = min(MAX_BLOCK_ROWS,
                     ((rows + SUBLANES - 1) // SUBLANES) * SUBLANES)
    num_blocks = pl.cdiv(rows, block_rows)

    # 2-way split of the block stream for the v7x megacore; harmless elsewhere.
    n_chunks = 2 if num_blocks >= 2 else 1
    chunk_blocks = pl.cdiv(num_blocks, n_chunks)

    x2 = xf.reshape(rows, LANES)
    y2 = yf.reshape(rows, LANES)

    def in_map(p, i):
        # Clamp: a trailing out-of-range logical block re-reads the last real
        # block instead of going OOB; its contribution is masked to zero.
        return (jnp.minimum(p * chunk_blocks + i, num_blocks - 1), 0)

    kernel = functools.partial(
        _charbonnier_kernel, eps=float(eps), n_valid=n,
        block_rows=block_rows, chunk_blocks=chunk_blocks)

    partial_sums = pl.pallas_call(
        kernel,
        out_shape=jax.ShapeDtypeStruct((n_chunks, SUBLANES, LANES), jnp.float32),
        grid_spec=pltpu.PrefetchScalarGridSpec(
            num_scalar_prefetch=0,
            grid=(n_chunks, chunk_blocks),
            in_specs=[
                pl.BlockSpec((block_rows, LANES), in_map),
                pl.BlockSpec((block_rows, LANES), in_map),
            ],
            out_specs=pl.BlockSpec((1, SUBLANES, LANES), lambda p, i: (p, 0, 0)),
        ),
        compiler_params=pltpu.CompilerParams(
            dimension_semantics=("parallel", "arbitrary"),
            vmem_limit_bytes=32 * 1024 * 1024,
        ),
    )(x2, y2)

    return jnp.sum(partial_sums) / jnp.float32(n)


if __name__ == "__main__":
    key = jax.random.PRNGKey(0)
    kx, ky = jax.random.split(key)
    # Small NCHW inputs consistent with a typical image-loss usage.
    x = jax.random.normal(kx, (2, 4, 16, 16), dtype=jnp.float32)
    y = jax.random.normal(ky, (2, 4, 16, 16), dtype=jnp.float32)

    loss = charbonnier_loss(x, y, eps=1e-3)
    loss = jax.block_until_ready(loss)

    # Reference check (plain JAX) for sanity.
    d = x - y
    ref = jnp.mean(jnp.sqrt(d * d + jnp.float32(1e-3) * jnp.float32(1e-3)))
    assert jnp.allclose(loss, ref, rtol=1e-5, atol=1e-6), (loss, ref)

    print("KERNEL_OK")
</pallas_src>

<mosaic_0001>
module attributes {stable_mosaic.version = 11 : i64} {
  func.func @_charbonnier_kernel(%arg0: i32, %arg1: i32, %arg2: memref<16x128xf32, #tpu.memory_space<vmem>>, %arg3: memref<16x128xf32, #tpu.memory_space<vmem>>, %arg4: memref<1x8x128xf32, #tpu.memory_space<vmem>>) attributes {dimension_semantics = [#tpu.dimension_semantics<parallel>, #tpu.dimension_semantics<arbitrary>], iteration_bounds = array<i64: 1, 1>, scalar_prefetch = 0 : i64, scratch_operands = 0 : i64, tpu.core_type = #tpu.core_type<tc>, window_params = [{transform_indices = @transform_0, window_bounds = array<i64: 16, 128>}, {transform_indices = @transform_1, window_bounds = array<i64: 16, 128>}, {transform_indices = @transform_2, window_bounds = array<i64: 1, 8, 128>}]} {
    %c0_i32 = arith.constant 0 : i32
    %0 = arith.cmpi eq, %arg1, %c0_i32 : i32
    %1 = arith.extui %0 : i1 to i32
    %c0_i32_0 = arith.constant 0 : i32
    %2 = arith.cmpi ne, %1, %c0_i32_0 : i32
    scf.if %2 {
      %cst_10 = arith.constant 0.000000e+00 : f32
      %21 = vector.broadcast %cst_10 : f32 to vector<1x8x128xf32>
      %c0_11 = arith.constant 0 : index
      %c0_12 = arith.constant 0 : index
      %c0_13 = arith.constant 0 : index
      %22 = vector.load %arg4[%c0_11, %c0_12, %c0_13] : memref<1x8x128xf32, #tpu.memory_space<vmem>>, vector<1x8x128xf32>
      tpu.vector_store %arg4[%c0_11, %c0_12, %c0_13], %21 {strides = array<i32>} : memref<1x8x128xf32, #tpu.memory_space<vmem>>, vector<1x8x128xf32>,
    } else {
    }
    %c0 = arith.constant 0 : index
    %c0_1 = arith.constant 0 : index
    %3 = vector.load %arg2[%c0, %c0_1] : memref<16x128xf32, #tpu.memory_space<vmem>>, vector<16x128xf32>
    %c0_2 = arith.constant 0 : index
    %c0_3 = arith.constant 0 : index
    %4 = vector.load %arg3[%c0_2, %c0_3] : memref<16x128xf32, #tpu.memory_space<vmem>>, vector<16x128xf32>
    %5 = arith.subf %3, %4 : vector<16x128xf32>
    %6 = arith.mulf %5, %5 : vector<16x128xf32>
    %cst = arith.constant 9.99999997E-7 : f32
    %7 = vector.broadcast %cst : f32 to vector<16x128xf32>
    %8 = arith.addf %6, %7 : vector<16x128xf32>
    %9 = math.sqrt %8 : vector<16x128xf32>
    %c1_i32 = arith.constant 1 : i32
    %10 = arith.muli %arg0, %c1_i32 : i32
    %11 = arith.addi %10, %arg1 : i32
    %c2048_i32 = arith.constant 2048 : i32
    %12 = arith.muli %11, %c2048_i32 : i32
    %c2048_i32_4 = arith.constant 2048 : i32
    %13 = arith.addi %12, %c2048_i32_4 : i32
    %c2048_i32_5 = arith.constant 2048 : i32
    %14 = arith.cmpi sle, %13, %c2048_i32_5 : i32
    %15 = arith.extui %14 : i1 to i32
    %c0_i32_6 = arith.constant 0 : i32
    %16 = arith.cmpi ne, %15, %c0_i32_6 : i32
    scf.if %16 {
      %c0_10 = arith.constant 0 : index
      %c0_11 = arith.constant 0 : index
      %c0_12 = arith.constant 0 : index
      %21 = vector.load %arg4[%c0_10, %c0_11, %c0_12] : memref<1x8x128xf32, #tpu.memory_space<vmem>>, vector<1x8x128xf32>
      %22 = vector.shape_cast %21 : vector<1x8x128xf32> to vector<8x128xf32>
      %23 = vector.shape_cast %9 : vector<16x128xf32> to vector<2x8x128xf32>
      %cst_13 = arith.constant dense<0.000000e+00> : vector<8x128xf32>
      %24 = vector.multi_reduction <add>, %23, %cst_13 [0] : vector<2x8x128xf32> to vector<8x128xf32>
      %25 = arith.addf %22, %24 : vector<8x128xf32>
      %c0_14 = arith.constant 0 : index
      %c0_15 = arith.constant 0 : index
      %c0_16 = arith.constant 0 : index
      %26 = vector.load %arg4[%c0_14, %c0_15, %c0_16] : memref<1x8x128xf32, #tpu.memory_space<vmem>>, vector<1x8x128xf32>
      %27 = vector.shape_cast %26 : vector<1x8x128xf32> to vector<8x128xf32>
      %28 = vector.shape_cast %25 : vector<8x128xf32> to vector<1x8x128xf32>
      tpu.vector_store %arg4[%c0_14, %c0_15, %c0_16], %28 {strides = array<i32>} : memref<1x8x128xf32, #tpu.memory_space<vmem>>, vector<1x8x128xf32>,
    } else {
    }
    %c2048_i32_7 = arith.constant 2048 : i32
    %17 = arith.addi %12, %c2048_i32_7 : i32
    %c2048_i32_8 = arith.constant 2048 : i32
    %18 = arith.cmpi sgt, %17, %c2048_i32_8 : i32
    %19 = arith.extui %18 : i1 to i32
    %c0_i32_9 = arith.constant 0 : i32
    %20 = arith.cmpi ne, %19, %c0_i32_9 : i32
    scf.if %20 {
      %21 = tpu.iota {dimensions = array<i32: 0>} : vector<16x128xi32>
      %22 = tpu.iota {dimensions = array<i32: 1>} : vector<16x128xi32>
      %c128_i32 = arith.constant 128 : i32
      %23 = vector.broadcast %c128_i32 : i32 to vector<16x128xi32>
      %24 = arith.muli %21, %23 : vector<16x128xi32>
      %25 = arith.addi %24, %22 : vector<16x128xi32>
      %c2048_i32_10 = arith.constant 2048 : i32
      %26 = arith.subi %c2048_i32_10, %12 : i32
      %27 = vector.broadcast %26 : i32 to vector<16x128xi32>
      %28 = arith.cmpi slt, %25, %27 : vector<16x128xi32>
      %cst_11 = arith.constant 0.000000e+00 : f32
      %29 = vector.broadcast %cst_11 : f32 to vector<16x128xf32>
      %30 = arith.select %28, %9, %29 : vector<16x128xi1>, vector<16x128xf32>
      %c0_12 = arith.constant 0 : index
      %c0_13 = arith.constant 0 : index
      %c0_14 = arith.constant 0 : index
      %31 = vector.load %arg4[%c0_12, %c0_13, %c0_14] : memref<1x8x128xf32, #tpu.memory_space<vmem>>, vector<1x8x128xf32>
      %32 = vector.shape_cast %31 : vector<1x8x128xf32> to vector<8x128xf32>
      %33 = vector.shape_cast %30 : vector<16x128xf32> to vector<2x8x128xf32>
      %cst_15 = arith.constant dense<0.000000e+00> : vector<8x128xf32>
      %34 = vector.multi_reduction <add>, %33, %cst_15 [0] : vector<2x8x128xf32> to vector<8x128xf32>
      %35 = arith.addf %32, %34 : vector<8x128xf32>
      %c0_16 = arith.constant 0 : index
      %c0_17 = arith.constant 0 : index
      %c0_18 = arith.constant 0 : index
      %36 = vector.load %arg4[%c0_16, %c0_17, %c0_18] : memref<1x8x128xf32, #tpu.memory_space<vmem>>, vector<1x8x128xf32>
      %37 = vector.shape_cast %36 : vector<1x8x128xf32> to vector<8x128xf32>
      %38 = vector.shape_cast %35 : vector<8x128xf32> to vector<1x8x128xf32>
      tpu.vector_store %arg4[%c0_16, %c0_17, %c0_18], %38 {strides = array<i32>} : memref<1x8x128xf32, #tpu.memory_space<vmem>>, vector<1x8x128xf32>,
    } else {
    }
    return
  }
  func.func @transform_0(%arg0: i32, %arg1: i32) -> (i32, i32) {
    %c1_i32 = arith.constant 1 : i32
    %0 = arith.muli %arg0, %c1_i32 : i32
    %1 = arith.addi %0, %arg1 : i32
    %c0_i32 = arith.constant 0 : i32
    %2 = arith.minsi %1, %c0_i32 : i32
    %c0_i32_0 = arith.constant 0 : i32
    %c0_i32_1 = arith.constant 0 : i32
    return %2, %c0_i32_0 : i32, i32
  }
  func.func @transform_1(%arg0: i32, %arg1: i32) -> (i32, i32) {
    %c1_i32 = arith.constant 1 : i32
    %0 = arith.muli %arg0, %c1_i32 : i32
    %1 = arith.addi %0, %arg1 : i32
    %c0_i32 = arith.constant 0 : i32
    %2 = arith.minsi %1, %c0_i32 : i32
    %c0_i32_0 = arith.constant 0 : i32
    %c0_i32_1 = arith.constant 0 : i32
    return %2, %c0_i32_0 : i32, i32
  }
  func.func @transform_2(%arg0: i32, %arg1: i32) -> (i32, i32, i32) {
    %c0_i32 = arith.constant 0 : i32
    %c0_i32_0 = arith.constant 0 : i32
    %c0_i32_1 = arith.constant 0 : i32
    return %arg0, %c0_i32, %c0_i32_0 : i32, i32, i32
  }
}

</mosaic_0001>

<bundles_post_ra>
// kernel: tpu_custom_call.1
= control target key start
LH: loop header
LB: loop body
LE: loop exit
PB: predicated region body
PF: predicated region fallthrough
CT: control target
= control target key end

     0   :  { %7 = vsyncpa [#allocation3], 0  ;;  %s281_s0 = inlined_call_operand.hbm [shape: f32[16,128], index: 0, kind: input, shape index: {}]   ;;  %s282_s1 = inlined_call_operand.hbm [shape: f32[16,128], index: 1, kind: input, shape index: {}]   ;;  %s283_s2 = inlined_call_operand.hbm [shape: f32[1,8,128], index: 2, kind: output, shape index: {}]  }
   0x1   :  { %8 = vsyncpa [#allocation6], 0 }
   0x2   :  { %9 = vsyncpa [#allocation4], 0  ;;  %s225_s9 = smov [#allocation2]   ;;  %s153_s13 = scalar_lea.hbm %s281_s0, 256 }
   0x3   :  { %s21_s10 = sshll.u32 %s225_s9, 4  ;;  %p154_p0 = scmp.ne.s32.totalorder %s281_s0, %s153_s13  ;;  %s22_s10 = int_to_ptr.vmem [resolvable:$true] %s21_s10 }
   0x4   :  { %p157_p1 = scmp.lt.u32.totalorder %s153_s13, %s281_s0 }
   0x6   :  { %p159_p2 = pnand %p157_p1, %p154_p0 }
   0x8   :  { %162 = shalt.err (!%p159_p2)
}
   0x9   :  { %s163_s18 = scalar_lea.vmem %s22_s10, 256  ;;  %p168_p4 = scmp.lt.s32.totalorder %s22_s10, %s22_s10 }
   0xa   :  { %p164_p3 = scmp.ne.s32.totalorder %s22_s10, %s163_s18  ;;  %p169_p5 = scmp.lt.s32.totalorder %s163_s18, %s163_s18 }
   0xc   :  { %p170_p6 = por %p169_p5, %p168_p4 }
   0xe   :  { %p171_p7 = pnand %p170_p6, %p164_p3 }
  0x10   :  { %174 = shalt.err (!%p171_p7)
}
  0x11   :  { %s226_s19 = smov 128   ;;  %s227_s20 = smov 8  }
  0x12   :  { %27 = dma.hbm_to_vmem [thread:$0]  %s281_s0, 256, %s22_s10, [#allocation3], %s226_s19, %s226_s19, %s227_s20  }
  0x13   :  { %s228_s23 = smov [#allocation5]   ;;  %s175_s27 = scalar_lea.hbm %s282_s1, 256 }
  0x14   :  { %s39_s24 = sshll.u32 %s228_s23, 4  ;;  %p176_p8 = scmp.ne.s32.totalorder %s282_s1, %s175_s27  ;;  %s40_s24 = int_to_ptr.vmem [resolvable:$true] %s39_s24 }
  0x15   :  { %p179_p9 = scmp.lt.u32.totalorder %s175_s27, %s282_s1 }
  0x17   :  { %p181_p10 = pnand %p179_p9, %p176_p8 }
  0x19   :  { %184 = shalt.err (!%p181_p10)
}
  0x1a   :  { %s185_s4 = scalar_lea.vmem %s40_s24, 256  ;;  %p190_p12 = scmp.lt.s32.totalorder %s40_s24, %s40_s24 }
  0x1b   :  { %p186_p11 = scmp.ne.s32.totalorder %s40_s24, %s185_s4  ;;  %p191_p13 = scmp.lt.s32.totalorder %s185_s4, %s185_s4 }
  0x1d   :  { %p192_p0 = por %p191_p13, %p190_p12 }
  0x1f   :  { %p193_p1 = pnand %p192_p0, %p186_p11 }
  0x21   :  { %196 = shalt.err (!%p193_p1)
}
  0x22   :  { %45 = dma.hbm_to_vmem [thread:$0]  %s282_s1, 256, %s40_s24, [#allocation6], %s226_s19, %s226_s19, %s227_s20  }
  0x23   :  { %219 = dma.done.wait [#allocation3], 256  }
  0x24   :  { %220 = vsyncadd [#allocation3], 4294967040 }
  0x25   :  { %221 = dma.done.wait [#allocation6], 256  }
  0x26   :  { %222 = vsyncadd [#allocation6], 4294967040  ;;  %v65_v0 = vld [vmem:[#allocation2] sm:$0xff]  ;;  %v66_v1 = vld [vmem:[#allocation2 + $0x8] sm:$0xff]  ;;  %s229_s1 = smov [#allocation7]  }
  0x27   :  { %v67_v2 = vld [vmem:[#allocation5] sm:$0xff]  ;;  %v68_v3 = vld [vmem:[#allocation5 + $0x8] sm:$0xff]  ;;  %s129_s6 = sshll.u32 %s229_s1, 4  ;;  %s130_s6 = int_to_ptr.vmem [resolvable:$true] %s129_s6 }
  0x28   :  { %v69_v4 = vsub.f32 %v65_v0, %v67_v2  ;;  %v70_v5 = vsub.f32 %v66_v1, %v68_v3  ;;  %s197_s7 = scalar_lea.vmem %s130_s6, 128  ;;  %p202_p3 = scmp.lt.s32.totalorder %s130_s6, %s130_s6 }
  0x29   :  { %p198_p2 = scmp.ne.s32.totalorder %s130_s6, %s197_s7  ;;  %p203_p4 = scmp.lt.s32.totalorder %s197_s7, %s197_s7 }
  0x2a   :  { %v71_v6 = vmul.f32 %v69_v4, %v69_v4  ;;  %v72_v7 = vmul.f32 %v70_v5, %v70_v5 }
  0x2b   :  { %p204_p5 = por %p203_p4, %p202_p3 }
  0x2c   :  { %v73_v8 = vadd.f32 1e-06, %v71_v6  ;;  %v74_v9 = vadd.f32 1e-06, %v72_v7 }
  0x2d   :  { %p205_p6 = pnand %p204_p5, %p198_p2 }
  0x2e   :  { %149 = vrsqrt.f32 %v73_v8  ;;  %vm77_vm0 = vcmp.eq.f32.partialorder %v73_v8, inf  ;;  %v80_v11 = vand.u32 2147483648, %v73_v8  ;;  %vm79_vm1 = vcmp.eq.f32.partialorder %v73_v8, 0.0 }
  0x2f   :  { %151 = vrsqrt.f32 %v74_v9  ;;  %vm84_vm2 = vcmp.eq.f32.partialorder %v74_v9, inf  ;;  %v87_v14 = vand.u32 2147483648, %v74_v9  ;;  %vm86_vm3 = vcmp.eq.f32.partialorder %v74_v9, 0.0 }
  0x38   :  { %v150_v10 = vpop.eup %149 }
  0x39   :  { %v152_v12 = vpop.eup %151  ;;  %v76_v13 = vmul.f32 %v150_v10, %v73_v8 }
  0x3a   :  { %v83_v15 = vmul.f32 %v152_v12, %v74_v9 }
  0x3b   :  { %v78_v16 = vsel %vm77_vm0, %v73_v8, %v76_v13 }
  0x3c   :  { %v81_v17 = vsel %vm79_vm1, %v80_v11, %v78_v16  ;;  %v85_v18 = vsel %vm84_vm2, %v74_v9, %v83_v15 }
  0x3d   :  { %v88_v19 = vsel %vm86_vm3, %v87_v14, %v85_v18 }
  0x3e   :  { %v97_v20 = vadd.f32 %v88_v19, %v81_v17 }
  0x40   :  { %99 = vst [vmem:[#allocation7] sm:$0xff] %v97_v20 }
  0x41   :  { %208 = shalt.err (!%p205_p6)
}
  0x42   :  { %s209_s10 = scalar_lea.hbm %s283_s2, 128 }
  0x43   :  { %p210_p7 = scmp.ne.s32.totalorder %s283_s2, %s209_s10  ;;  %p213_p8 = scmp.lt.u32.totalorder %s209_s10, %s283_s2 }
  0x45   :  { %p215_p9 = pnand %p213_p8, %p210_p7 }
  0x47   :  { %218 = shalt.err (!%p215_p9)
}
  0x48   :  { %132 = dma.vmem_to_hbm [thread:$0]  %s130_s6, 128, %s283_s2, [#allocation4]  }
  0x49   :  { %223 = dma.done.wait [#allocation4], 128  }
  0x4a   :  { %224 = vsyncadd [#allocation4], 4294967168 }
  0x4b   :  { %136 = vsyncpa [#allocation3], 1 }
  0x4c   :  { %137 = vsyncpa [#allocation6], 1 }
  0x4d   :  { %138 = vsyncpa [#allocation4], 1 }

</bundles_post_ra>
